<compile_context>
chip_gen: v7x
topology: tpu7x:2x2x1
jax: 0.10.0
libtpu: 0.0.40
codegen_flags: <defaults>
</compile_context>

<pallas_src>
import jax
import jax.numpy as jnp
from jax.experimental import pallas as pl
from jax.experimental.pallas import tpu as pltpu


# ---------------------------------------------------------------------------
# Pallas kernel: one batch element per grid step.
# Refs are (1, C, H*W) blocks with H*W on the lane axis.
# ---------------------------------------------------------------------------
def _diff_enhance_kernel(x1_ref, x2_ref, fuse_ref, f1_ref, f2_ref):
    x1 = x1_ref[0].astype(jnp.float32)        # (C, HW)
    x2 = x2_ref[0].astype(jnp.float32)
    fuse = fuse_ref[0].astype(jnp.float32)

    hw = x1.shape[-1]
    inv_hw = jnp.float32(1.0 / hw)

    # Per-channel global average of (x1 - x2), without building the (C, HW)
    # difference temporary: mean(x1 - x2) = (sum(x1) - sum(x2)) / HW.
    s1 = jnp.sum(x1, axis=-1, keepdims=True)  # (C, 1)
    s2 = jnp.sum(x2, axis=-1, keepdims=True)  # (C, 1)
    m12 = (s1 - s2) * inv_hw                  # (C, 1)

    w12 = jax.nn.sigmoid(m12)                 # (C, 1), broadcasts over lanes
    w21 = jax.nn.sigmoid(-m12)

    f1_ref[0] = (w12 * fuse + x1).astype(f1_ref.dtype)
    f2_ref[0] = (w21 * fuse + x2).astype(f2_ref.dtype)


def differential_enhance_forward(fuse_nchw, x1_nchw, x2_nchw):
    """NCHW in / NCHW out. Only free reshapes at the boundary."""
    B, C, H, W = x1_nchw.shape
    HW = H * W

    # Contiguous NCHW -> (B, C, H*W) is a view-like reshape (no transpose).
    rs = lambda t: t.reshape(B, C, HW)
    x1_r, x2_r, fuse_r = rs(x1_nchw), rs(x2_nchw), rs(fuse_nchw)

    blk = pl.BlockSpec((1, C, HW), lambda b: (b, 0, 0))
    out_shape = jax.ShapeDtypeStruct((B, C, HW), x1_nchw.dtype)

    f1, f2 = pl.pallas_call(
        _diff_enhance_kernel,
        out_shape=(out_shape, out_shape),
        grid_spec=pltpu.PrefetchScalarGridSpec(
            num_scalar_prefetch=0,
            grid=(B,),
            in_specs=[blk, blk, blk],
            out_specs=[blk, blk],
        ),
        compiler_params=pltpu.CompilerParams(
            dimension_semantics=("parallel",)),
    )(x1_r, x2_r, fuse_r)

    return f1.reshape(B, C, H, W), f2.reshape(B, C, H, W)


# ---------------------------------------------------------------------------
# Pure-JAX reference (mirrors the PyTorch forward) for validation.
# ---------------------------------------------------------------------------
def differential_enhance_reference(fuse, x1, x2):
    m12 = jnp.mean(x1 - x2, axis=(2, 3), keepdims=True)   # (B, C, 1, 1)
    w12 = jax.nn.sigmoid(m12)
    w21 = jax.nn.sigmoid(-m12)
    return w12 * fuse + x1, w21 * fuse + x2


if __name__ == "__main__":
    key = jax.random.PRNGKey(0)
    B, C, H, W = 2, 48, 16, 16   # nf = 48 (module default); H*W = 256 lanes

    ks = jax.random.split(key, 3)
    fuse = jax.random.normal(ks[0], (B, C, H, W), jnp.float32)
    x1 = jax.random.normal(ks[1], (B, C, H, W), jnp.float32)
    x2 = jax.random.normal(ks[2], (B, C, H, W), jnp.float32)

    # TODO(synk): self.lastconv (Conv2d nf -> nf//2) is declared in __init__ but
    # never used in Differential_enhance.forward, so it is intentionally omitted.

    f1, f2 = jax.jit(differential_enhance_forward)(fuse, x1, x2)
    jax.block_until_ready((f1, f2))

    r1, r2 = differential_enhance_reference(fuse, x1, x2)
    assert jnp.allclose(f1, r1, atol=1e-5, rtol=1e-5), "F_1 mismatch"
    assert jnp.allclose(f2, r2, atol=1e-5, rtol=1e-5), "F_2 mismatch"

    print("KERNEL_OK")
</pallas_src>

<mosaic_0001>
module attributes {stable_mosaic.version = 11 : i64} {
  func.func @_diff_enhance_kernel(%arg0: i32, %arg1: memref<1x48x256xf32, #tpu.memory_space<vmem>>, %arg2: memref<1x48x256xf32, #tpu.memory_space<vmem>>, %arg3: memref<1x48x256xf32, #tpu.memory_space<vmem>>, %arg4: memref<1x48x256xf32, #tpu.memory_space<vmem>>, %arg5: memref<1x48x256xf32, #tpu.memory_space<vmem>>) attributes {dimension_semantics = [#tpu.dimension_semantics<parallel>], iteration_bounds = array<i64: 2>, scalar_prefetch = 0 : i64, scratch_operands = 0 : i64, tpu.core_type = #tpu.core_type<tc>, window_params = [{transform_indices = @transform_0, window_bounds = array<i64: 1, 48, 256>}, {transform_indices = @transform_1, window_bounds = array<i64: 1, 48, 256>}, {transform_indices = @transform_2, window_bounds = array<i64: 1, 48, 256>}, {transform_indices = @transform_3, window_bounds = array<i64: 1, 48, 256>}, {transform_indices = @transform_4, window_bounds = array<i64: 1, 48, 256>}]} {
    %c0 = arith.constant 0 : index
    %c0_0 = arith.constant 0 : index
    %c0_1 = arith.constant 0 : index
    %0 = vector.load %arg1[%c0, %c0_0, %c0_1] : memref<1x48x256xf32, #tpu.memory_space<vmem>>, vector<1x48x256xf32>
    %1 = vector.shape_cast %0 : vector<1x48x256xf32> to vector<48x256xf32>
    %c0_2 = arith.constant 0 : index
    %c0_3 = arith.constant 0 : index
    %c0_4 = arith.constant 0 : index
    %2 = vector.load %arg2[%c0_2, %c0_3, %c0_4] : memref<1x48x256xf32, #tpu.memory_space<vmem>>, vector<1x48x256xf32>
    %3 = vector.shape_cast %2 : vector<1x48x256xf32> to vector<48x256xf32>
    %c0_5 = arith.constant 0 : index
    %c0_6 = arith.constant 0 : index
    %c0_7 = arith.constant 0 : index
    %4 = vector.load %arg3[%c0_5, %c0_6, %c0_7] : memref<1x48x256xf32, #tpu.memory_space<vmem>>, vector<1x48x256xf32>
    %5 = vector.shape_cast %4 : vector<1x48x256xf32> to vector<48x256xf32>
    %cst = arith.constant dense<0.000000e+00> : vector<48xf32>
    %6 = vector.multi_reduction <add>, %1, %cst [1] : vector<48x256xf32> to vector<48xf32>
    %7 = vector.shape_cast %6 : vector<48xf32> to vector<48x1xf32>
    %cst_8 = arith.constant dense<0.000000e+00> : vector<48xf32>
    %8 = vector.multi_reduction <add>, %3, %cst_8 [1] : vector<48x256xf32> to vector<48xf32>
    %9 = vector.shape_cast %8 : vector<48xf32> to vector<48x1xf32>
    %10 = arith.subf %7, %9 : vector<48x1xf32>
    %cst_9 = arith.constant 3.906250e-03 : f32
    %11 = vector.broadcast %cst_9 : f32 to vector<48x1xf32>
    %12 = arith.mulf %10, %11 : vector<48x1xf32>
    %13 = arith.negf %12 : vector<48x1xf32>
    %14 = math.exp %13 : vector<48x1xf32>
    %cst_10 = arith.constant 1.000000e+00 : f32
    %15 = vector.broadcast %cst_10 : f32 to vector<48x1xf32>
    %16 = arith.addf %15, %14 : vector<48x1xf32>
    %17 = arith.divf %15, %16 : vector<48x1xf32>
    %cst_11 = arith.constant 0.000000e+00 : f32
    %18 = vector.broadcast %cst_11 : f32 to vector<48x1xf32>
    %19 = arith.subf %18, %12 : vector<48x1xf32>
    %20 = arith.negf %19 : vector<48x1xf32>
    %21 = math.exp %20 : vector<48x1xf32>
    %cst_12 = arith.constant 1.000000e+00 : f32
    %22 = vector.broadcast %cst_12 : f32 to vector<48x1xf32>
    %23 = arith.addf %22, %21 : vector<48x1xf32>
    %24 = arith.divf %22, %23 : vector<48x1xf32>
    %25 = vector.broadcast %17 : vector<48x1xf32> to vector<48x256xf32>
    %26 = arith.mulf %25, %5 : vector<48x256xf32>
    %27 = arith.addf %26, %1 : vector<48x256xf32>
    %c0_13 = arith.constant 0 : index
    %c0_14 = arith.constant 0 : index
    %c0_15 = arith.constant 0 : index
    %28 = vector.load %arg4[%c0_13, %c0_14, %c0_15] : memref<1x48x256xf32, #tpu.memory_space<vmem>>, vector<1x48x256xf32>
    %29 = vector.shape_cast %28 : vector<1x48x256xf32> to vector<48x256xf32>
    %30 = vector.shape_cast %27 : vector<48x256xf32> to vector<1x48x256xf32>
    tpu.vector_store %arg4[%c0_13, %c0_14, %c0_15], %30 {strides = array<i32>} : memref<1x48x256xf32, #tpu.memory_space<vmem>>, vector<1x48x256xf32>,
    %31 = vector.broadcast %24 : vector<48x1xf32> to vector<48x256xf32>
    %32 = arith.mulf %31, %5 : vector<48x256xf32>
    %33 = arith.addf %32, %3 : vector<48x256xf32>
    %c0_16 = arith.constant 0 : index
    %c0_17 = arith.constant 0 : index
    %c0_18 = arith.constant 0 : index
    %34 = vector.load %arg5[%c0_16, %c0_17, %c0_18] : memref<1x48x256xf32, #tpu.memory_space<vmem>>, vector<1x48x256xf32>
    %35 = vector.shape_cast %34 : vector<1x48x256xf32> to vector<48x256xf32>
    %36 = vector.shape_cast %33 : vector<48x256xf32> to vector<1x48x256xf32>
    tpu.vector_store %arg5[%c0_16, %c0_17, %c0_18], %36 {strides = array<i32>} : memref<1x48x256xf32, #tpu.memory_space<vmem>>, vector<1x48x256xf32>,
    return
  }
  func.func @transform_0(%arg0: i32) -> (i32, i32, i32) {
    %c0_i32 = arith.constant 0 : i32
    %c0_i32_0 = arith.constant 0 : i32
    %c0_i32_1 = arith.constant 0 : i32
    return %arg0, %c0_i32, %c0_i32_0 : i32, i32, i32
  }
  func.func @transform_1(%arg0: i32) -> (i32, i32, i32) {
    %c0_i32 = arith.constant 0 : i32
    %c0_i32_0 = arith.constant 0 : i32
    %c0_i32_1 = arith.constant 0 : i32
    return %arg0, %c0_i32, %c0_i32_0 : i32, i32, i32
  }
  func.func @transform_2(%arg0: i32) -> (i32, i32, i32) {
    %c0_i32 = arith.constant 0 : i32
    %c0_i32_0 = arith.constant 0 : i32
    %c0_i32_1 = arith.constant 0 : i32
    return %arg0, %c0_i32, %c0_i32_0 : i32, i32, i32
  }
  func.func @transform_3(%arg0: i32) -> (i32, i32, i32) {
    %c0_i32 = arith.constant 0 : i32
    %c0_i32_0 = arith.constant 0 : i32
    %c0_i32_1 = arith.constant 0 : i32
    return %arg0, %c0_i32, %c0_i32_0 : i32, i32, i32
  }
  func.func @transform_4(%arg0: i32) -> (i32, i32, i32) {
    %c0_i32 = arith.constant 0 : i32
    %c0_i32_0 = arith.constant 0 : i32
    %c0_i32_1 = arith.constant 0 : i32
    return %arg0, %c0_i32, %c0_i32_0 : i32, i32, i32
  }
}

</mosaic_0001>

<bundles_post_ra>
// kernel: differential_enhance_forward.1
= control target key start
LH: loop header
LB: loop body
LE: loop exit
PB: predicated region body
PF: predicated region fallthrough
CT: control target
= control target key end

     0   :  { %s711_s15 = smov 0   ;;  %s882_s0 = inlined_call_operand.vmem [shape: f32[2,48,256], index: 0, kind: input, shape index: {}]   ;;  %s883_s1 = inlined_call_operand.vmem [shape: f32[2,48,256], index: 1, kind: input, shape index: {}]   ;;  %s884_s2 = inlined_call_operand.vmem [shape: f32[2,48,256], index: 2, kind: input, shape index: {}]   ;;  %s885_s3 = inlined_call_operand.vmem [shape: f32[2,48,256], index: 3, kind: output, shape index: {0}]   ;;  %s886_s4 = inlined_call_operand.vmem [shape: f32[2,48,256], index: 4, kind: output, shape index: {1}]  }
   0x1 LB: > { %s597_s16 = sadd.s32 4294967295, %s684_s15   ;;  %p601_p0 = scmp.ge.s32.totalorder %s684_s15, 1  ;;  %s684_s15 = sphi %s711_s15, %s15_s15  }
   0x2   : > { %p185_p1 = scmp.lt.s32.totalorder %s684_s15, 3 }
   0x4   : > { %p186_p2 = pnand %p601_p0, %p185_p1 }
   0x5   : > { %p226_p3 = scmp.lt.s32.totalorder (!%p186_p2), %s597_s16, 1 }
   0x6   : > { %189 = sbr.rel (%p186_p2) target bundleno = 222 (0xde), region = 32 }
   0xd   : > { %s888_s16 = smov (!%p226_p3, %s597_s16), 1 }
   0xe   : > { %s719_s17 = smul.u32 96, %s888_s16 }
  0x10   : > { %s230_s20 = scalar_lea.vmem %s882_s0, %s719_s17  ;;  %s235_s23 = scalar_lea.vmem %s883_s1, %s719_s17 }
  0x11   : > { %v725_v0 = vld [vmem:[%s230_s20 + $0x20] sm:$0xff]  ;;  %v727_v1 = vld [vmem:[%s230_s20 + $0x28] sm:$0xff]  ;;  %v735_v5 = vld [vmem:[%s230_s20 + $0x30] sm:$0xff]  ;;  %s805_s26 = scalar_lea.vmem %s884_s2, %s719_s17  ;;  %s815_s29 = scalar_lea.vmem %s885_s3, %s719_s17 }
  0x12   : > { %v729_v2 = vld [vmem:[%s230_s20] sm:$0xff]  ;;  %v293_v3 = vadd.f32 %v727_v1, %v725_v0  ;;  %v733_v4 = vld [vmem:[%s230_s20 + $0x8] sm:$0xff]  ;;  %v737_v6 = vld [vmem:[%s230_s20 + $0x38] sm:$0xff]  ;;  %s827_s6 = scalar_lea.vmem %s886_s4, %s719_s17 }
  0x13   : > { %v287_v7 = vadd.f32 %v733_v4, %v729_v2  ;;  %v741_v8 = vld [vmem:[%s230_s20 + $0x10] sm:$0xff]  ;;  %v743_v9 = vld [vmem:[%s230_s20 + $0x18] sm:$0xff]  ;;  %v296_v10 = vadd.f32 %v737_v6, %v735_v5  ;;  %v753_v14 = vld [vmem:[%s230_s20 + $0x40] sm:$0xff] }
  0x14   : > { %294 = vadd.xlane.f32.xlu1 %v293_v3  ;;  %v290_v11 = vadd.f32 %v743_v9, %v741_v8  ;;  %v749_v12 = vld [vmem:[%s230_s20 + $0x50] sm:$0xff]  ;;  %v751_v13 = vld [vmem:[%s230_s20 + $0x58] sm:$0xff]  ;;  %v755_v15 = vld [vmem:[%s230_s20 + $0x48] sm:$0xff] }
  0x15   : > { %288 = vadd.xlane.f32.xlu0 %v287_v7  ;;  %v302_v16 = vadd.f32 %v751_v13, %v749_v12  ;;  %v299_v17 = vadd.f32 %v755_v15, %v753_v14  ;;  %v765_v18 = vld [vmem:[%s235_s23 + $0x10] sm:$0xff]  ;;  %v767_v19 = vld [vmem:[%s235_s23 + $0x18] sm:$0xff]  ;;  %v769_v20 = vld [vmem:[%s235_s23] sm:$0xff] }
  0x16   : > { %v771_v21 = vld [vmem:[%s235_s23 + $0x8] sm:$0xff]  ;;  %v308_v22 = vadd.f32 %v767_v19, %v765_v18  ;;  %v777_v24 = vld [vmem:[%s235_s23 + $0x30] sm:$0xff]  ;;  %v779_v25 = vld [vmem:[%s235_s23 + $0x38] sm:$0xff] }
  0x17   : > { %v305_v23 = vadd.f32 %v771_v21, %v769_v20  ;;  %v781_v26 = vld [vmem:[%s235_s23 + $0x20] sm:$0xff]  ;;  %v783_v27 = vld [vmem:[%s235_s23 + $0x28] sm:$0xff]  ;;  %v314_v28 = vadd.f32 %v779_v25, %v777_v24  ;;  %v789_v30 = vld [vmem:[%s235_s23 + $0x50] sm:$0xff] }
  0x18   : > { %297 = vadd.xlane.f32.xlu1 %v296_v10  ;;  %v311_v29 = vadd.f32 %v783_v27, %v781_v26  ;;  %v791_v31 = vld [vmem:[%s235_s23 + $0x58] sm:$0xff]  ;;  %v793_v32 = vld [vmem:[%s235_s23 + $0x40] sm:$0xff]  ;;  %v795_v33 = vld [vmem:[%s235_s23 + $0x48] sm:$0xff] }
  0x19   : > { %291 = vadd.xlane.f32.xlu0 %v290_v11  ;;  %v320_v34 = vadd.f32 %v791_v31, %v789_v30  ;;  %v317_v35 = vadd.f32 %v795_v33, %v793_v32 }
  0x1c   : > { %303 = vadd.xlane.f32.xlu1 %v302_v16 }
  0x1d   : > { %300 = vadd.xlane.f32.xlu0 %v299_v17 }
  0x20   : > { %309 = vadd.xlane.f32.xlu1 %v308_v22 }
  0x21   : > { %306 = vadd.xlane.f32.xlu0 %v305_v23 }
  0x24   : > { %315 = vadd.xlane.f32.xlu1 %v314_v28 }
  0x25   : > { %312 = vadd.xlane.f32.xlu0 %v311_v29 }
  0x28   : > { %321 = vadd.xlane.f32.xlu1 %v320_v34 }
  0x29   : > { %318 = vadd.xlane.f32.xlu0 %v317_v35 }
  0xa1   : > { %v295_v36 = vpop.xlane.xlu1 %294 }
  0xa2   : > { %v289_v37 = vpop.xlane.xlu0 %288 }
  0xa5   : > { %v298_v38 = vpop.xlane.xlu1 %297 }
  0xa6   : > { %v292_v39 = vpop.xlane.xlu0 %291 }
  0xa9   : > { %v304_v40 = vpop.xlane.xlu1 %303 }
  0xaa   : > { %v301_v41 = vpop.xlane.xlu0 %300 }
  0xad   : > { %v310_v42 = vpop.xlane.xlu1 %309 }
  0xae   : > { %v324_v43 = vsub.f32 %v292_v39, %v310_v42  ;;  %v307_v44 = vpop.xlane.xlu0 %306 }
  0xaf   : > { %v323_v45 = vsub.f32 %v289_v37, %v307_v44 }
  0xb0   : > { %v330_v46 = vmul.f32 0.00390625, %v324_v43  ;;  %v608_v47 = vmul.f32 -0.00390625, %v324_v43 }
  0xb1   : > { %v329_v48 = vmul.f32 0.00390625, %v323_v45  ;;  %v607_v49 = vmul.f32 -0.00390625, %v323_v45  ;;  %v316_v50 = vpop.xlane.xlu1 %315 }
  0xb2   : > { %v343_v51 = vmul.f32 1.442695, %v608_v47  ;;  %v372_v52 = vsub.f32 0.0, %v330_v46  ;;  %v326_v53 = vsub.f32 %v298_v38, %v316_v50  ;;  %v313_v54 = vpop.xlane.xlu0 %312 }
  0xb3   : > { %v341_v55 = vmul.f32 1.442695, %v607_v49  ;;  %v371_v56 = vsub.f32 0.0, %v329_v48  ;;  %v325_v57 = vsub.f32 %v295_v36, %v313_v54 }
  0xb4   : > { %630 = vpow2.f32 %v343_v51  ;;  %v614_v58 = vmul.f32 -1.442695, %v372_v52  ;;  %v332_v59 = vmul.f32 0.00390625, %v326_v53  ;;  %v610_v60 = vmul.f32 -0.00390625, %v326_v53 }
  0xb5   : > { %632 = vpow2.f32 %v341_v55  ;;  %v613_v61 = vmul.f32 -1.442695, %v371_v56  ;;  %v331_v62 = vmul.f32 0.00390625, %v325_v57  ;;  %v609_v63 = vmul.f32 -0.00390625, %v325_v57  ;;  %v322_v3 = vpop.xlane.xlu1 %321 }
  0xb6   : > { %634 = vpow2.f32 %v614_v58  ;;  %v347_v7 = vmul.f32 1.442695, %v610_v60  ;;  %v374_v10 = vsub.f32 0.0, %v332_v59  ;;  %v328_v11 = vsub.f32 %v304_v40, %v322_v3  ;;  %v319_v16 = vpop.xlane.xlu0 %318 }
  0xb7   : > { %636 = vpow2.f32 %v613_v61  ;;  %v345_v17 = vmul.f32 1.442695, %v609_v63  ;;  %v373_v22 = vsub.f32 0.0, %v331_v62  ;;  %v327_v23 = vsub.f32 %v301_v41, %v319_v16 }
  0xb8   : > { %638 = vpow2.f32 %v347_v7  ;;  %v616_v28 = vmul.f32 -1.442695, %v374_v10  ;;  %v334_v29 = vmul.f32 0.00390625, %v328_v11  ;;  %v612_v34 = vmul.f32 -0.00390625, %v328_v11  ;;  %v277_v10 = vld [vmem:[%s805_s26 + $0x10] sm:$0xff]  ;;  %v278_v11 = vld [vmem:[%s805_s26 + $0x18] sm:$0xff] }
  0xb9   : > { %640 = vpow2.f32 %v345_v17  ;;  %v615_v35 = vmul.f32 -1.442695, %v373_v22  ;;  %v333_v36 = vmul.f32 0.00390625, %v327_v23  ;;  %v611_v37 = vmul.f32 -0.00390625, %v327_v23  ;;  %v275_v17 = vld [vmem:[%s805_s26] sm:$0xff]  ;;  %v276_v22 = vld [vmem:[%s805_s26 + $0x8] sm:$0xff] }
  0xba   : > { %642 = vpow2.f32 %v616_v28  ;;  %v351_v38 = vmul.f32 1.442695, %v612_v34  ;;  %v376_v39 = vsub.f32 0.0, %v334_v29 }
  0xbb   : > { %644 = vpow2.f32 %v615_v35  ;;  %v349_v42 = vmul.f32 1.442695, %v611_v37  ;;  %v375_v43 = vsub.f32 0.0, %v333_v36 }
  0xbc   : > { %646 = vpow2.f32 %v351_v38  ;;  %v618_v40 = vmul.f32 -1.442695, %v376_v39  ;;  %v281_v39 = vld [vmem:[%s805_s26 + $0x30] sm:$0xff] }
  0xbd   : > { %648 = vpow2.f32 %v349_v42  ;;  %v617_v44 = vmul.f32 -1.442695, %v375_v43  ;;  %v282_v42 = vld [vmem:[%s805_s26 + $0x38] sm:$0xff] }
  0xbe   : > { %v631_v45 = vpop.eup %630  ;;  %650 = vpow2.f32 %v618_v40 }
  0xbf   : > { %v633_v41 = vpop.eup %632  ;;  %v354_v46 = vadd.f32 1.0, %v631_v45  ;;  %652 = vpow2.f32 %v617_v44 }
  0xc0   : > { %v635_v47 = vpop.eup %634  ;;  %v353_v48 = vadd.f32 1.0, %v633_v41 }
  0xc1   : > { %v637_v49 = vpop.eup %636  ;;  %654 = vrcp.f32 %v354_v46  ;;  %v396_v50 = vadd.f32 1.0, %v635_v47  ;;  %v279_v46 = vld [vmem:[%s805_s26 + $0x20] sm:$0xff]  ;;  %v280_v47 = vld [vmem:[%s805_s26 + $0x28] sm:$0xff] }
  0xc2   : > { %v639_v51 = vpop.eup %638  ;;  %656 = vrcp.f32 %v353_v48  ;;  %v395_v52 = vadd.f32 1.0, %v637_v49 }
  0xc3   : > { %v641_v53 = vpop.eup %640  ;;  %658 = vrcp.f32 %v396_v50  ;;  %v356_v54 = vadd.f32 1.0, %v639_v51 }
  0xc4   : > { %v643_v55 = vpop.eup %642  ;;  %660 = vrcp.f32 %v395_v52  ;;  %v355_v56 = vadd.f32 1.0, %v641_v53 }
  0xc5   : > { %v645_v57 = vpop.eup %644  ;;  %662 = vrcp.f32 %v356_v54  ;;  %v398_v58 = vadd.f32 1.0, %v643_v55 }
  0xc6   : > { %v647_v59 = vpop.eup %646  ;;  %664 = vrcp.f32 %v355_v56  ;;  %v397_v60 = vadd.f32 1.0, %v645_v57 }
  0xc7   : > { %v649_v61 = vpop.eup %648  ;;  %666 = vrcp.f32 %v398_v58  ;;  %v358_v62 = vadd.f32 1.0, %v647_v59  ;;  %v285_v59 = vld [vmem:[%s805_s26 + $0x50] sm:$0xff] }
  0xc8   : > { %v651_v63 = vpop.eup %650  ;;  %668 = vrcp.f32 %v397_v60  ;;  %v357_v3 = vadd.f32 1.0, %v649_v61  ;;  %v286_v60 = vld [vmem:[%s805_s26 + $0x58] sm:$0xff] }
  0xc9   : > { %v653_v7 = vpop.eup %652  ;;  %670 = vrcp.f32 %v358_v62  ;;  %v400_v16 = vadd.f32 1.0, %v651_v63 }
  0xca   : > { %672 = vrcp.f32 %v357_v3  ;;  %v399_v23 = vadd.f32 1.0, %v653_v7  ;;  %v284_v3 = vld [vmem:[%s805_s26 + $0x48] sm:$0xff] }
  0xcb   : > { %v655_v28 = vpop.eup %654  ;;  %674 = vrcp.f32 %v400_v16 }
  0xcc   : > { %v657_v29 = vpop.eup %656  ;;  %v415_v34 = vmul.f32 %v655_v28, %v277_v10  ;;  %v416_v35 = vmul.f32 %v655_v28, %v278_v11  ;;  %676 = vrcp.f32 %v399_v23 }
  0xcd   : > { %v659_v36 = vpop.eup %658  ;;  %v413_v37 = vmul.f32 %v657_v29, %v275_v17  ;;  %v414_v38 = vmul.f32 %v657_v29, %v276_v22 }
  0xce   : > { %v661_v43 = vpop.eup %660  ;;  %v427_v40 = vadd.f32 %v415_v34, %v741_v8  ;;  %v428_v44 = vadd.f32 %v416_v35, %v743_v9  ;;  %v451_v45 = vmul.f32 %v659_v36, %v277_v10  ;;  %v452_v41 = vmul.f32 %v659_v36, %v278_v11 }
  0xcf   : > { %v663_v48 = vpop.eup %662  ;;  %v425_v49 = vadd.f32 %v413_v37, %v729_v2  ;;  %v426_v50 = vadd.f32 %v414_v38, %v733_v4  ;;  %v449_v51 = vmul.f32 %v661_v43, %v275_v17  ;;  %v450_v8 = vmul.f32 %v661_v43, %v276_v22 }
  0xd0   : > { %v665_v9 = vpop.eup %664  ;;  %439 = vst [vmem:[%s815_s29 + $0x10] sm:$0xff] %v427_v40  ;;  %440 = vst [vmem:[%s815_s29 + $0x18] sm:$0xff] %v428_v44  ;;  %v463_v52 = vadd.f32 %v451_v45, %v765_v18  ;;  %v464_v53 = vadd.f32 %v452_v41, %v767_v19  ;;  %v419_v54 = vmul.f32 %v663_v48, %v281_v39 }
  0xd1   : > { %v420_v55 = vmul.f32 %v663_v48, %v282_v42  ;;  %v667_v56 = vpop.eup %666  ;;  %437 = vst [vmem:[%s815_s29] sm:$0xff] %v425_v49  ;;  %438 = vst [vmem:[%s815_s29 + $0x8] sm:$0xff] %v426_v50  ;;  %v461_v2 = vadd.f32 %v449_v51, %v769_v20  ;;  %v462_v4 = vadd.f32 %v450_v8, %v771_v21  ;;  %v283_v20 = vld [vmem:[%s805_s26 + $0x40] sm:$0xff] }
  0xd2   : > { %v417_v57 = vmul.f32 %v665_v9, %v279_v46  ;;  %v418_v58 = vmul.f32 %v665_v9, %v280_v47  ;;  %v669_v18 = vpop.eup %668  ;;  %475 = vst [vmem:[%s827_s6 + $0x10] sm:$0xff] %v463_v52  ;;  %476 = vst [vmem:[%s827_s6 + $0x18] sm:$0xff] %v464_v53  ;;  %v431_v19 = vadd.f32 %v419_v54, %v735_v5 }
  0xd3   : > { %v432_v61 = vadd.f32 %v420_v55, %v737_v6  ;;  %v455_v62 = vmul.f32 %v667_v56, %v281_v39  ;;  %v456_v63 = vmul.f32 %v667_v56, %v282_v42  ;;  %v671_v21 = vpop.eup %670  ;;  %473 = vst [vmem:[%s827_s6] sm:$0xff] %v461_v2  ;;  %474 = vst [vmem:[%s827_s6 + $0x8] sm:$0xff] %v462_v4 }
  0xd4   : > { %v429_v7 = vadd.f32 %v417_v57, %v725_v0  ;;  %v430_v10 = vadd.f32 %v418_v58, %v727_v1  ;;  %v453_v11 = vmul.f32 %v669_v18, %v279_v46  ;;  %v454_v16 = vmul.f32 %v669_v18, %v280_v47  ;;  %v673_v17 = vpop.eup %672  ;;  %443 = vst [vmem:[%s815_s29 + $0x30] sm:$0xff] %v431_v19 }
  0xd5   : > { %444 = vst [vmem:[%s815_s29 + $0x38] sm:$0xff] %v432_v61  ;;  %v467_v5 = vadd.f32 %v455_v62, %v777_v24  ;;  %v468_v6 = vadd.f32 %v456_v63, %v779_v25  ;;  %v423_v22 = vmul.f32 %v671_v21, %v285_v59  ;;  %v424_v23 = vmul.f32 %v671_v21, %v286_v60  ;;  %v675_v28 = vpop.eup %674 }
  0xd6   : > { %441 = vst [vmem:[%s815_s29 + $0x20] sm:$0xff] %v429_v7  ;;  %442 = vst [vmem:[%s815_s29 + $0x28] sm:$0xff] %v430_v10  ;;  %v465_v0 = vadd.f32 %v453_v11, %v781_v26  ;;  %v466_v1 = vadd.f32 %v454_v16, %v783_v27  ;;  %v421_v29 = vmul.f32 %v673_v17, %v283_v20  ;;  %v677_v35 = vpop.eup %676 }
  0xd7   : > { %v422_v34 = vmul.f32 %v673_v17, %v284_v3  ;;  %479 = vst [vmem:[%s827_s6 + $0x30] sm:$0xff] %v467_v5  ;;  %480 = vst [vmem:[%s827_s6 + $0x38] sm:$0xff] %v468_v6  ;;  %v435_v24 = vadd.f32 %v423_v22, %v749_v12  ;;  %v436_v25 = vadd.f32 %v424_v23, %v751_v13 }
  0xd8   : > { %v459_v36 = vmul.f32 %v675_v28, %v285_v59  ;;  %v460_v37 = vmul.f32 %v675_v28, %v286_v60  ;;  %477 = vst [vmem:[%s827_s6 + $0x20] sm:$0xff] %v465_v0  ;;  %478 = vst [vmem:[%s827_s6 + $0x28] sm:$0xff] %v466_v1  ;;  %v433_v26 = vadd.f32 %v421_v29, %v753_v14 }
  0xd9   : > { %v434_v27 = vadd.f32 %v422_v34, %v755_v15  ;;  %v457_v38 = vmul.f32 %v677_v35, %v283_v20  ;;  %v458_v39 = vmul.f32 %v677_v35, %v284_v3  ;;  %447 = vst [vmem:[%s815_s29 + $0x50] sm:$0xff] %v435_v24  ;;  %448 = vst [vmem:[%s815_s29 + $0x58] sm:$0xff] %v436_v25 }
  0xda   : > { %v471_v12 = vadd.f32 %v459_v36, %v789_v30  ;;  %v472_v13 = vadd.f32 %v460_v37, %v791_v31  ;;  %445 = vst [vmem:[%s815_s29 + $0x40] sm:$0xff] %v433_v26 }
  0xdb   : > { %446 = vst [vmem:[%s815_s29 + $0x48] sm:$0xff] %v434_v27  ;;  %v469_v42 = vadd.f32 %v457_v38, %v793_v32  ;;  %v470_v43 = vadd.f32 %v458_v39, %v795_v33 }
  0xdc   : > { %483 = vst [vmem:[%s827_s6 + $0x50] sm:$0xff] %v471_v12  ;;  %484 = vst [vmem:[%s827_s6 + $0x58] sm:$0xff] %v472_v13 }
  0xdd   : > { %481 = vst [vmem:[%s827_s6 + $0x40] sm:$0xff] %v469_v42  ;;  %482 = vst [vmem:[%s827_s6 + $0x48] sm:$0xff] %v470_v43 }
  0xde PF: > { %s15_s15 = sadd.s32 1, %s684_s15  }
  0xdf   : > { %p12_p4 = scmp.ge.s32.totalorder %s15_s15, 4  }
  0xe1   :  { %14 = sbr.rel (!%p12_p4) target bundleno = 1 (0x1), region = 80 }

</bundles_post_ra>
